<compile_context>
chip_gen: v7x
topology: tpu7x:2x2x1
jax: 0.10.0
libtpu: 0.0.40
codegen_flags: <defaults>
</compile_context>

<pallas_src>
import math

import jax
import jax.numpy as jnp
from jax.experimental import pallas as pl
from jax.experimental.pallas import tpu as pltpu


def _round_up(x, n):
    return ((x + n - 1) // n) * n


def _make_mlp_kernel(n_layers, layer_dtypes):
    """Fused MLP kernel for `n_layers` Linear layers.

    Kernel ref order: (x_ref, w0, b0, w1, b1, ..., w_{n-1}, b_{n-1}, out_ref).
    SiLU is applied after every layer except the last one.
    `layer_dtypes[i]` is the operand dtype expected by layer i's matmul.
    """

    def kernel(x_ref, *refs):
        out_ref = refs[-1]
        param_refs = refs[:-1]
        h = x_ref[...]  # native dtype operand -> MXU handles bf16/f32 directly
        for i in range(n_layers):
            w = param_refs[2 * i][...]
            b = param_refs[2 * i + 1][...].astype(jnp.float32)
            # MXU matmul with f32 accumulation; bias broadcast over rows (f32).
            acc = jnp.dot(h, w, preferred_element_type=jnp.float32) + b
            if i < n_layers - 1:
                nxt = jnp.dtype(layer_dtypes[i + 1])
                if nxt == jnp.dtype(jnp.bfloat16):
                    # bf16 VPU/EUP on v6e/v7x: halve elementwise work + intermediate
                    # footprint by running SiLU in bf16 when operands are bf16.
                    a = acc.astype(jnp.bfloat16)
                    h = a * jax.nn.sigmoid(a)
                else:
                    # SiLU / swish in f32: x * sigmoid(x) (sigmoid goes to the EUP).
                    acc = acc * jax.nn.sigmoid(acc)
                    h = acc.astype(nxt)
            else:
                h = acc
        out_ref[...] = h.astype(out_ref.dtype)

    return kernel


def mlp_pallas(x, weights, biases, *, tile_m=4096, matmul_dtype=None):
    """Run the fused MLP kernel.

    x:            (..., d_in) array
    weights:      list of (d_i, d_{i+1}) arrays
    biases:       list of (d_{i+1},) arrays
    tile_m:       row-tile size (sweep 2048/4096/8192 on real workloads; mult of 8).
    matmul_dtype: optional operand dtype for the matmuls (e.g. jnp.bfloat16).
                  Accumulation stays f32; output keeps x.dtype.
    """
    n_layers = len(weights)
    assert n_layers == len(biases) and n_layers >= 1

    d_in = int(weights[0].shape[0])
    d_out = int(weights[-1].shape[1])
    lead_shape = x.shape[:-1]
    assert x.shape[-1] == d_in
    out_dtype = x.dtype

    m = int(math.prod(lead_shape)) if lead_shape else 1
    assert m > 0
    x2d = x.reshape(m, d_in)

    if matmul_dtype is not None:
        matmul_dtype = jnp.dtype(matmul_dtype)
        x2d = x2d.astype(matmul_dtype)
        weights = [w.astype(matmul_dtype) for w in weights]

    # ---- Row tile selection --------------------------------------------------
    # Multiple of 8 (f32 sublane packing).
    tile_m = max(8, (int(tile_m) // 8) * 8)
    # v7x megacore: keep the grid length >= 2 whenever M > 8 so the "parallel"
    # axis actually shards across both TensorCores; no-op cost on v5e/v6e.
    half_rows = _round_up(pl.cdiv(m, 2), 8)
    tile_m_eff = max(8, min(tile_m, half_rows))

    # ---- VMEM budget with 128-lane / 8-sublane padding -----------------------
    widths = [d_in] + [int(w.shape[1]) for w in weights]
    widths_p = [_round_up(w, 128) for w in widths]  # lane-padded block widths
    itemsize_x = jnp.dtype(x2d.dtype).itemsize
    itemsize_out = jnp.dtype(out_dtype).itemsize

    param_bytes = 0
    for w, b in zip(weights, biases):
        di, do = int(w.shape[0]), int(w.shape[1])
        param_bytes += _round_up(di, 8) * _round_up(do, 128) * jnp.dtype(w.dtype).itemsize
        param_bytes += 8 * _round_up(do, 128) * jnp.dtype(b.dtype).itemsize

    def vmem_estimate(tm):
        io_bytes = (
            2 * tm * widths_p[0] * itemsize_x      # double-buffered input blocks
            + 2 * tm * widths_p[-1] * itemsize_out  # double-buffered output blocks
        )
        inter_bytes = 3 * tm * max(widths_p) * 4    # f32 intermediates + headroom
        return io_bytes + 2 * param_bytes + inter_bytes

    vmem_budget = 48 * 1024 * 1024  # stay under v7x's 64 MiB/TC physical VMEM
    while vmem_estimate(tile_m_eff) > vmem_budget and tile_m_eff > 512:
        tile_m_eff = max(512, ((tile_m_eff // 2) // 8) * 8)

    # Ragged trailing block handled by Pallas: no host-side padding copy of x.
    grid = (pl.cdiv(m, tile_m_eff),)

    # ---- Block specs ----------------------------------------------------------
    in_specs = [pl.BlockSpec((tile_m_eff, d_in), lambda i: (i, 0))]
    params = []
    layer_dtypes = []
    for w, b in zip(weights, biases):
        di, do = int(w.shape[0]), int(w.shape[1])
        # Weights/biases: full-array, grid-invariant blocks (tiny -> double-buffer free).
        in_specs.append(pl.BlockSpec((di, do), lambda i: (0, 0)))
        in_specs.append(pl.BlockSpec((1, do), lambda i: (0, 0)))
        params.append(w)
        params.append(b.reshape(1, do))
        layer_dtypes.append(w.dtype)

    out_spec = pl.BlockSpec((tile_m_eff, d_out), lambda i: (i, 0))

    # ---- Cost estimate (advisory; lets XLA schedule around the kernel) -------
    flops = 2 * m * sum(int(w.shape[0]) * int(w.shape[1]) for w in weights)
    transcendentals = m * sum(int(w.shape[1]) for w in weights[:-1])
    bytes_accessed = (
        m * d_in * itemsize_x
        + m * d_out * itemsize_out
        + sum(int(w.size) * jnp.dtype(w.dtype).itemsize for w in weights)
        + sum(int(b.size) * jnp.dtype(b.dtype).itemsize for b in biases)
    )
    cost = pl.CostEstimate(
        flops=flops, transcendentals=transcendentals, bytes_accessed=bytes_accessed
    )

    vmem_limit = int(
        min(64 * 1024 * 1024, max(32 * 1024 * 1024, 2 * vmem_estimate(tile_m_eff)))
    )

    kernel = _make_mlp_kernel(n_layers, layer_dtypes)
    y2d = pl.pallas_call(
        kernel,
        out_shape=jax.ShapeDtypeStruct((m, d_out), out_dtype),
        grid_spec=pltpu.PrefetchScalarGridSpec(
            num_scalar_prefetch=0,
            grid=grid,
            in_specs=in_specs,
            out_specs=out_spec,
        ),
        compiler_params=pltpu.CompilerParams(
            dimension_semantics=("parallel",),  # row tiles shard across TCs (v7x)
            vmem_limit_bytes=vmem_limit,
        ),
        cost_estimate=cost,
    )(x2d, *params)

    return y2d.reshape(*lead_shape, d_out)


def mlp_reference(x, weights, biases):
    """Pure-JAX reference for correctness checking."""
    h = x.astype(jnp.float32)
    n = len(weights)
    for i, (w, b) in enumerate(zip(weights, biases)):
        h = h @ w.astype(jnp.float32) + b.astype(jnp.float32)
        if i < n - 1:
            h = h * jax.nn.sigmoid(h)
    return h.astype(x.dtype)


def init_mlp_params(key, dimensions, dtype=jnp.float32):
    """Deterministic init mimicking torch Linear: U(-1/sqrt(fan_in), 1/sqrt(fan_in))."""
    weights, biases = [], []
    n_layers = len(dimensions) - 1
    keys = jax.random.split(key, 2 * n_layers)
    for i in range(n_layers):
        fan_in, fan_out = dimensions[i], dimensions[i + 1]
        bound = 1.0 / math.sqrt(fan_in)
        w = jax.random.uniform(
            keys[2 * i], (fan_in, fan_out), dtype, minval=-bound, maxval=bound
        )
        b = jax.random.uniform(
            keys[2 * i + 1], (fan_out,), dtype, minval=-bound, maxval=bound
        )
        weights.append(w)
        biases.append(b)
    return weights, biases


if __name__ == "__main__":
    # MLP(32, 64, 64, 16): linear_0(32->64)+SiLU, linear_1(64->64)+SiLU, final(64->16)
    dimensions = (32, 64, 64, 16)

    key = jax.random.PRNGKey(0)
    k_x, k_p, k_x2 = jax.random.split(key, 3)

    weights, biases = init_mlp_params(k_p, dimensions, jnp.float32)

    # 1) f32 path, even M (2*8=16 rows, 2 grid steps on the megacore clamp).
    x = jax.random.normal(k_x, (2, 8, dimensions[0]), jnp.float32)
    y = jax.block_until_ready(mlp_pallas(x, weights, biases))
    y_ref = mlp_reference(x, weights, biases)
    assert y.shape == (2, 8, dimensions[-1]), y.shape
    assert jnp.allclose(y, y_ref, atol=1e-5, rtol=1e-5), "f32 mismatch vs reference"

    # 2) Ragged trailing block: M = 3*7 = 21 does not divide the row tile.
    x2 = jax.random.normal(k_x2, (3, 7, dimensions[0]), jnp.float32)
    y2 = jax.block_until_ready(mlp_pallas(x2, weights, biases))
    y2_ref = mlp_reference(x2, weights, biases)
    assert y2.shape == (3, 7, dimensions[-1]), y2.shape
    assert jnp.allclose(y2, y2_ref, atol=1e-5, rtol=1e-5), "ragged-M mismatch"

    # 3) bf16-operand path (mixed precision: bf16 MXU operands, f32 accumulation).
    y3 = jax.block_until_ready(mlp_pallas(x, weights, biases, matmul_dtype=jnp.bfloat16))
    assert y3.shape == (2, 8, dimensions[-1]), y3.shape
    assert jnp.allclose(
        y3.astype(jnp.float32), y_ref.astype(jnp.float32), atol=5e-2, rtol=5e-2
    ), "bf16 mismatch vs reference (loose tolerance)"

    print("KERNEL_OK")
</pallas_src>

<mosaic_0001>
module attributes {stable_mosaic.version = 11 : i64} {
  func.func @kernel(%arg0: i32, %arg1: memref<8x32xf32, #tpu.memory_space<vmem>>, %arg2: memref<32x64xf32, #tpu.memory_space<vmem>>, %arg3: memref<1x64xf32, #tpu.memory_space<vmem>>, %arg4: memref<64x64xf32, #tpu.memory_space<vmem>>, %arg5: memref<1x64xf32, #tpu.memory_space<vmem>>, %arg6: memref<64x16xf32, #tpu.memory_space<vmem>>, %arg7: memref<1x16xf32, #tpu.memory_space<vmem>>, %arg8: memref<8x16xf32, #tpu.memory_space<vmem>>) attributes {dimension_semantics = [#tpu.dimension_semantics<parallel>], iteration_bounds = array<i64: 2>, scalar_prefetch = 0 : i64, scratch_operands = 0 : i64, tpu.core_type = #tpu.core_type<tc>, window_params = [{transform_indices = @transform_0, window_bounds = array<i64: 8, 32>}, {pipeline_mode = #tpu.pipeline_mode<synchronous>, transform_indices = @transform_1, window_bounds = array<i64: 32, 64>}, {pipeline_mode = #tpu.pipeline_mode<synchronous>, transform_indices = @transform_2, window_bounds = array<i64: 1, 64>}, {pipeline_mode = #tpu.pipeline_mode<synchronous>, transform_indices = @transform_3, window_bounds = array<i64: 64, 64>}, {pipeline_mode = #tpu.pipeline_mode<synchronous>, transform_indices = @transform_4, window_bounds = array<i64: 1, 64>}, {pipeline_mode = #tpu.pipeline_mode<synchronous>, transform_indices = @transform_5, window_bounds = array<i64: 64, 16>}, {pipeline_mode = #tpu.pipeline_mode<synchronous>, transform_indices = @transform_6, window_bounds = array<i64: 1, 16>}, {transform_indices = @transform_7, window_bounds = array<i64: 8, 16>}]} {
    %c0 = arith.constant 0 : index
    %c0_0 = arith.constant 0 : index
    %0 = vector.load %arg1[%c0, %c0_0] : memref<8x32xf32, #tpu.memory_space<vmem>>, vector<8x32xf32>
    %c0_1 = arith.constant 0 : index
    %c0_2 = arith.constant 0 : index
    %1 = vector.load %arg2[%c0_1, %c0_2] : memref<32x64xf32, #tpu.memory_space<vmem>>, vector<32x64xf32>
    %c0_3 = arith.constant 0 : index
    %c0_4 = arith.constant 0 : index
    %2 = vector.load %arg3[%c0_3, %c0_4] : memref<1x64xf32, #tpu.memory_space<vmem>>, vector<1x64xf32>
    %cst = arith.constant dense<0.000000e+00> : vector<8x64xf32>
    %3 = tpu.matmul %0, %1, %cst {dimension_numbers = #tpu.dot_dimension_numbers<[1], [0], [0], [1], [0, 0, 1, 1], [], []>} : vector<8x32xf32>, vector<32x64xf32>, vector<8x64xf32> -> vector<8x64xf32>
    %4 = vector.broadcast %2 : vector<1x64xf32> to vector<8x64xf32>
    %5 = arith.addf %3, %4 : vector<8x64xf32>
    %6 = arith.negf %5 : vector<8x64xf32>
    %7 = math.exp %6 : vector<8x64xf32>
    %cst_5 = arith.constant 1.000000e+00 : f32
    %8 = vector.broadcast %cst_5 : f32 to vector<8x64xf32>
    %9 = arith.addf %8, %7 : vector<8x64xf32>
    %10 = arith.divf %8, %9 : vector<8x64xf32>
    %11 = arith.mulf %5, %10 : vector<8x64xf32>
    %c0_6 = arith.constant 0 : index
    %c0_7 = arith.constant 0 : index
    %12 = vector.load %arg4[%c0_6, %c0_7] : memref<64x64xf32, #tpu.memory_space<vmem>>, vector<64x64xf32>
    %c0_8 = arith.constant 0 : index
    %c0_9 = arith.constant 0 : index
    %13 = vector.load %arg5[%c0_8, %c0_9] : memref<1x64xf32, #tpu.memory_space<vmem>>, vector<1x64xf32>
    %cst_10 = arith.constant dense<0.000000e+00> : vector<8x64xf32>
    %14 = tpu.matmul %11, %12, %cst_10 {dimension_numbers = #tpu.dot_dimension_numbers<[1], [0], [0], [1], [0, 0, 1, 1], [], []>} : vector<8x64xf32>, vector<64x64xf32>, vector<8x64xf32> -> vector<8x64xf32>
    %15 = vector.broadcast %13 : vector<1x64xf32> to vector<8x64xf32>
    %16 = arith.addf %14, %15 : vector<8x64xf32>
    %17 = arith.negf %16 : vector<8x64xf32>
    %18 = math.exp %17 : vector<8x64xf32>
    %cst_11 = arith.constant 1.000000e+00 : f32
    %19 = vector.broadcast %cst_11 : f32 to vector<8x64xf32>
    %20 = arith.addf %19, %18 : vector<8x64xf32>
    %21 = arith.divf %19, %20 : vector<8x64xf32>
    %22 = arith.mulf %16, %21 : vector<8x64xf32>
    %c0_12 = arith.constant 0 : index
    %c0_13 = arith.constant 0 : index
    %23 = vector.load %arg6[%c0_12, %c0_13] : memref<64x16xf32, #tpu.memory_space<vmem>>, vector<64x16xf32>
    %c0_14 = arith.constant 0 : index
    %c0_15 = arith.constant 0 : index
    %24 = vector.load %arg7[%c0_14, %c0_15] : memref<1x16xf32, #tpu.memory_space<vmem>>, vector<1x16xf32>
    %cst_16 = arith.constant dense<0.000000e+00> : vector<8x16xf32>
    %25 = tpu.matmul %22, %23, %cst_16 {dimension_numbers = #tpu.dot_dimension_numbers<[1], [0], [0], [1], [0, 0, 1, 1], [], []>} : vector<8x64xf32>, vector<64x16xf32>, vector<8x16xf32> -> vector<8x16xf32>
    %26 = vector.broadcast %24 : vector<1x16xf32> to vector<8x16xf32>
    %27 = arith.addf %25, %26 : vector<8x16xf32>
    %c0_17 = arith.constant 0 : index
    %c0_18 = arith.constant 0 : index
    %28 = vector.load %arg8[%c0_17, %c0_18] : memref<8x16xf32, #tpu.memory_space<vmem>>, vector<8x16xf32>
    tpu.vector_store %arg8[%c0_17, %c0_18], %27 {strides = array<i32>} : memref<8x16xf32, #tpu.memory_space<vmem>>, vector<8x16xf32>,
    return
  }
  func.func @transform_0(%arg0: i32) -> (i32, i32) {
    %c0_i32 = arith.constant 0 : i32
    %c0_i32_0 = arith.constant 0 : i32
    return %arg0, %c0_i32 : i32, i32
  }
  func.func @transform_1(%arg0: i32) -> (i32, i32) {
    %c0_i32 = arith.constant 0 : i32
    %c0_i32_0 = arith.constant 0 : i32
    %c0_i32_1 = arith.constant 0 : i32
    return %c0_i32, %c0_i32_0 : i32, i32
  }
  func.func @transform_2(%arg0: i32) -> (i32, i32) {
    %c0_i32 = arith.constant 0 : i32
    %c0_i32_0 = arith.constant 0 : i32
    %c0_i32_1 = arith.constant 0 : i32
    return %c0_i32, %c0_i32_0 : i32, i32
  }
  func.func @transform_3(%arg0: i32) -> (i32, i32) {
    %c0_i32 = arith.constant 0 : i32
    %c0_i32_0 = arith.constant 0 : i32
    %c0_i32_1 = arith.constant 0 : i32
    return %c0_i32, %c0_i32_0 : i32, i32
  }
  func.func @transform_4(%arg0: i32) -> (i32, i32) {
    %c0_i32 = arith.constant 0 : i32
    %c0_i32_0 = arith.constant 0 : i32
    %c0_i32_1 = arith.constant 0 : i32
    return %c0_i32, %c0_i32_0 : i32, i32
  }
  func.func @transform_5(%arg0: i32) -> (i32, i32) {
    %c0_i32 = arith.constant 0 : i32
    %c0_i32_0 = arith.constant 0 : i32
    %c0_i32_1 = arith.constant 0 : i32
    return %c0_i32, %c0_i32_0 : i32, i32
  }
  func.func @transform_6(%arg0: i32) -> (i32, i32) {
    %c0_i32 = arith.constant 0 : i32
    %c0_i32_0 = arith.constant 0 : i32
    %c0_i32_1 = arith.constant 0 : i32
    return %c0_i32, %c0_i32_0 : i32, i32
  }
  func.func @transform_7(%arg0: i32) -> (i32, i32) {
    %c0_i32 = arith.constant 0 : i32
    %c0_i32_0 = arith.constant 0 : i32
    return %arg0, %c0_i32 : i32, i32
  }
}

</mosaic_0001>

<bundles_post_ra>
// kernel: tpu_custom_call.1
= control target key start
LH: loop header
LB: loop body
LE: loop exit
PB: predicated region body
PF: predicated region fallthrough
CT: control target
= control target key end

     0   :  { %12 = vsyncpa [#allocation3], 0  ;;  %s1188_s0 = inlined_call_operand.vmem [shape: f32[16,32], index: 0, kind: input, shape index: {}]   ;;  %s1189_s1 = inlined_call_operand.hbm [shape: f32[32,64], index: 1, kind: input, shape index: {}]   ;;  %s1190_s2 = inlined_call_operand.vmem [shape: f32[1,64], index: 2, kind: input, shape index: {}]   ;;  %s1191_s3 = inlined_call_operand.vmem [shape: f32[64,64], index: 3, kind: input, shape index: {}]   ;;  %s1192_s4 = inlined_call_operand.vmem [shape: f32[1,64], index: 4, kind: input, shape index: {}]   ;;  %s1193_s5 = inlined_call_operand.vmem [shape: f32[64,16], index: 5, kind: input, shape index: {}]   ;;  %s1194_s6 = inlined_call_operand.vmem [shape: f32[1,16], index: 6, kind: input, shape index: {}]   ;;  %s1195_s7 = inlined_call_operand.hbm [shape: f32[16,16], index: 7, kind: output, shape index: {}]  }
   0x1   :  { %13 = vsyncpa [#allocation4], 0 }
   0x2   :  { %15 = vsyncpa [#allocation4 + $0x1], 0  ;;  %s981_s24 = smov 0   ;;  %s983_s25 = smov 0  }
   0x3   :  { %s985_s26 = smov 0   ;;  %s987_s27 = smov 0  }
   0x4 LB: > { %s1002_s28 = sadd.s32 4294967295, %s932_s27   ;;  %s653_s29 = sadd.s32 4294967294, %s932_s27   ;;  %s932_s27 = sphi %s987_s27, %s1211_s27   ;;  %s928_s26 = sphi %s985_s26, %s1210_s26   ;;  %s924_s25 = sphi %s983_s25, %s1209_s25   ;;  %s920_s24 = sphi %s981_s24, %s1208_s24  }
   0x5   : > { %s1006_s30 = sadd.s32 1, %s932_s27   ;;  %s180_s8 = sadd.s32 1, %s928_s26 }
   0x6   : > { %s177_s9 = ssub.s32 %s932_s27, %s1006_s30  ;;  %p190_p0 = scmp.ne.s32.totalorder %s928_s26, %s924_s25 }
   0x7   : > { %p178_p1 = scmp.eq.s32.totalorder %s177_s9, 0  ;;  %p191_p2 = scmp.eq.s32.totalorder %s1002_s28, 1 }
   0x8   : > { %p196_p3 = scmp.ne.s32.totalorder %s924_s25, %s920_s24  ;;  %p197_p4 = scmp.eq.s32.totalorder %s653_s29, 1 }
   0x9   : > { %s1017_s10 = scalar_select %p178_p1, %s928_s26, %s180_s8  }
   0xa   : > { %p1019_p5 = por %p191_p2, %p190_p0  ;;  %p1023_p6 = por %p197_p4, %p196_p3 }
   0xb   : > { %p654_p7 = scmp.ge.s32.totalorder %s932_s27, 1  ;;  %p204_p8 = scmp.lt.s32.totalorder %s932_s27, 3 }
   0xc   : > { %s1199_s11 = scalar_select %p1019_p5, 1, 0 }
   0xd   : > { %s1200_s12 = scalar_select %p1023_p6, 1, 0 }
   0xe   : > { %p1196_p9 = scmp.eq.s32.totalorder %s1002_s28, 0  ;;  %p1030_p10 = pnand %p654_p7, %p204_p8 }
   0xf   : > { %s934_s14 = smov [#allocation2]   ;;  %s838_s19 = scalar_lea.hbm %s1189_s1, 512 }
  0x10   : > { %s1201_s13 = scalar_select %p1030_p10, 1, 0 }
  0x11   : > { %s216_s15 = sshll.u32 %s934_s14, 4  ;;  %p781_p11 = pneg %p1030_p10  ;;  %s217_s15 = int_to_ptr.vmem [resolvable:$true] %s216_s15 }
  0x12   : > { %p839_p13 = scmp.ne.s32.totalorder %s1189_s1, %s838_s19  ;;  %p845_p3 = scmp.lt.u32.totalorder %s838_s19, %s1189_s1 }
  0x13   : > { %p1038_p12 = pnand %p1196_p9, %p781_p11 }
  0x15   : > { %p840_p0 = pneg %p1038_p12 }
  0x17   : > { %p841_p1 = pnand %p840_p0, %p839_p13 }
  0x19   : > { %p842_p2 = pneg %p841_p1 }
  0x1b   : > { %p847_p4 = pnand %p845_p3, %p842_p2 }
  0x1d   : > { %850 = shalt.err (!%p847_p4)
}
  0x1e   : > { %s851_s29 = scalar_lea.vmem %s217_s15, 512  ;;  %p859_p9 = scmp.lt.s32.totalorder %s217_s15, %s217_s15 }
  0x1f   : > { %p852_p7 = scmp.ne.s32.totalorder %s217_s15, %s851_s29  ;;  %p860_p6 = scmp.lt.s32.totalorder %s851_s29, %s851_s29 }
  0x21   : > { %p854_p8 = pnand %p852_p7, %p840_p0  ;;  %p861_p5 = por %p860_p6, %p859_p9 }
  0x23   : > { %p855_p11 = pneg %p854_p8 }
  0x25   : > { %p862_p10 = pnand %p861_p5, %p855_p11 }
  0x27   : > { %865 = shalt.err (!%p862_p10)
}
  0x28   : > { %s935_s8 = smov 128   ;;  %s936_s9 = smov 8  }
  0x29   : > { %784 = dma.hbm_to_vmem [thread:$0]  (!%p1038_p12), %s1189_s1, 512, %s217_s15, [#allocation3], %s935_s8, %s935_s8, %s936_s9  }
  0x2a   : > { %p1203_p13 = scmp.ne.s32.totalorder %s1201_s13, 0 }
  0x2b   : > { %p1204_p1 = scmp.eq.s32.totalorder (!%p1203_p13), %s1002_s28, 0 }
  0x2c   : > { %254 = sbr.rel (%p1203_p13) target bundleno = 774 (0x306), region = 48 }
  0x33   : > { %911 = dma.done.wait (%p1204_p1), [#allocation3], 512   ;;  %p1205_p0 = pmov %p1204_p1 }
  0x34   : > { %p285_p5 = scmp.lt.s32.totalorder %s1002_s28, 1  ;;  %v937_v0 = vmov 0.0|0.0   ;;  %vm938_vm0 = vmmov 0   ;;  %v939_v1 = vmov 0.0   ;;  %v290_v2 = vld [vmem:[#allocation2] sm:$0xff]  ;;  %v291_v3 = vld [vmem:[#allocation2 + $0x8] sm:$0xff] }
  0x35   : > { %913 = vsyncadd (%p1205_p0), [#allocation3], 4294966784  ;;  %745 = vmatprep.subr.bf16.mxu0 %v937_v0  ;;  %704 = vmatprep.mubr.msk.f32.mxu0 %vm938_vm0, %v939_v1  ;;  %v292_v4 = vld [vmem:[#allocation2 + $0x10] sm:$0xff]  ;;  %v746_v5 = vpack.c.bf16 %v291_v3, %v290_v2  ;;  %v293_v6 = vld [vmem:[#allocation2 + $0x18] sm:$0xff]  ;;  %vm301_vm1 = vcmask 261120   ;;  %vm397_vm2 = vcmask 523264  }
  0x36   : > { %751 = vmatprep.subr.bf16.mxu1 %v937_v0  ;;  %723 = vmatprep.mubr.msk.f32.mxu1 %vm938_vm0, %v939_v1  ;;  %s286_s13 = scalar_select %p285_p5, %s1002_s28, 1  ;;  %v749_v7 = vpack.c.bf16 %v293_v6, %v292_v4  ;;  %v382_v9 = vld [vmem:[%s1191_s3] sm:$0xff]  ;;  %v383_v10 = vld [vmem:[%s1191_s3 + $0x8] sm:$0xff]  ;;  %v384_v12 = vld [vmem:[%s1191_s3 + $0x10] sm:$0xff]  ;;  %vm566_vm3 = vcmask 130048  }
  0x37   : > { %747 = vmatpush3.bf16.msra.mxu0 %v746_v5  ;;  %v752_v11 = vpack.c.bf16 %v383_v10, %v382_v9  ;;  %v385_v13 = vld [vmem:[%s1191_s3 + $0x18] sm:$0xff]  ;;  %v386_v15 = vld [vmem:[%s1191_s3 + $0x20] sm:$0xff]  ;;  %v387_v16 = vld [vmem:[%s1191_s3 + $0x28] sm:$0xff]  ;;  %s282_s17 = sand.u32 1, %s924_s25   ;;  %s670_s18 = sshll.u32 %s1002_s28, 7 }
  0x38   : > { %s660_s15 = sshll.u32 %s286_s13, 3  ;;  %748 = vmatprep.subr.bf16.mxu0 %v937_v0  ;;  %v755_v14 = vpack.c.bf16 %v385_v13, %v384_v12  ;;  %v758_v17 = vpack.c.bf16 %v387_v16, %v386_v15  ;;  %v388_v18 = vld [vmem:[%s1191_s3 + $0x30] sm:$0xff]  ;;  %v389_v19 = vld [vmem:[%s1191_s3 + $0x38] sm:$0xff]  ;;  %v661_v21 = vld [vmem:[%s1190_s2] ss:$0 sm:$0xff]  ;;  %s659_s13 = sshll.u32 %s282_s17, 3 }
  0x39   : > { %s288_s19 = scalar_lea.vmem %s1188_s0, %s660_s15  ;;  %753 = vmatpush3.bf16.msra.mxu1 %v752_v11  ;;  %v761_v20 = vpack.c.bf16 %v389_v19, %v388_v18  ;;  %v478_v30 = vld [vmem:[%s1193_s5] sm:$0xff]  ;;  %v479_v31 = vld [vmem:[%s1193_s5 + $0x8] sm:$0xff]  ;;  %v480_v33 = vld [vmem:[%s1193_s5 + $0x10] sm:$0xff]  ;;  %s1146_s23 = scalar_lea.hbm %s1195_s7, %s670_s18 }
  0x3a   : > { %v289_v8 = vld [vmem:[%s288_s19] sm:$0xff]  ;;  %754 = vmatprep.subr.bf16.mxu1 %v937_v0  ;;  %v764_v32 = vpack.c.bf16 %v479_v31, %v478_v30  ;;  %v481_v34 = vld [vmem:[%s1193_s5 + $0x18] sm:$0xff]  ;;  %v483_v37 = vld [vmem:[%s1193_s5 + $0x28] sm:$0xff]  ;;  %s284_s19 = scalar_lea.vmem [#allocation5], %s659_s13  ;;  %s569_s29 = scalar_lea.sflag [#allocation4], %s282_s17 }
  0x3b   : > { %750 = vmatpush3.bf16.msra.mxu0 %v749_v7  ;;  %v767_v35 = vpack.c.bf16 %v481_v34, %v480_v33  ;;  %v482_v36 = vld [vmem:[%s1193_s5 + $0x20] sm:$0xff]  ;;  %v484_v39 = vld [vmem:[%s1193_s5 + $0x30] sm:$0xff]  ;;  %v485_v40 = vld [vmem:[%s1193_s5 + $0x38] sm:$0xff]  ;;  %s582_s20 = sshll.u32 %s284_s19, 4  ;;  %p1206_p9 = scmp.ne.s32.totalorder %s1199_s11, 0  ;;  %s1148_s20 = int_to_ptr.vmem [resolvable:$true] %s582_s20 }
  0x3c   : > { %763 = vmatprep.subr.bf16.mxu0 %v937_v0  ;;  %v770_v38 = vpack.c.bf16 %v483_v37, %v482_v36  ;;  %v773_v41 = vpack.c.bf16 %v485_v40, %v484_v39  ;;  %v664_v42 = vld [vmem:[%s1192_s4] ss:$0 sm:$0xff]  ;;  %s866_s8 = scalar_lea.vmem %s1148_s20, 128  ;;  %s940_s28 = smov [#allocation5]  }
  0x3d   : > { %756 = vmatpush3.bf16.msra.mxu1 %v755_v14  ;;  %v667_v51 = vld [vmem:[%s1194_s6] ss:$0 sm:$0xff]  ;;  %p867_p6 = scmp.ne.s32.totalorder %s1148_s20, %s866_s8  ;;  %s870_s9 = sshll.u32 %s940_s28, 4  ;;  %s871_s9 = int_to_ptr.vmem [resolvable:$false] %s870_s9 }
  0x3e   : > { %705 = vmatmul.mubr.msk.f32.vlgmr.msra.gmra.mrb[0].mxu0 %vm301_vm1, %v289_v8  ;;  %757 = vmatprep.subr.bf16.mxu1 %v937_v0  ;;  %s872_s14 = scalar_lea.vmem %s871_s9, 256  ;;  %p873_p2 = scmp.lt.s32.totalorder %s1148_s20, %s871_s9 }
  0x3f   : > { %742 = vmatprep.mubr.msk.f32.mxu0 %vm938_vm0, %v939_v1  ;;  %765 = vmatpush3.bf16.msra.mxu0 %v764_v32  ;;  %p868_p10 = pnand %p867_p6, %p1206_p9  ;;  %p874_p3 = scmp.lt.s32.totalorder %s872_s14, %s866_s8 }
  0x40   : > { %766 = vmatprep.subr.bf16.mxu0 %v937_v0 }
  0x41   : > { %759 = vmatpush3.bf16.msra.mxu1 %v758_v17  ;;  %p869_p12 = pneg %p868_p10  ;;  %p875_p4 = por %p874_p3, %p873_p2 }
  0x42   : > { %760 = vmatprep.subr.bf16.mxu1 %v937_v0 }
  0x43   : > { %768 = vmatpush3.bf16.msra.mxu0 %v767_v35  ;;  %p876_p7 = pnand %p875_p4, %p869_p12 }
  0x44   : > { %769 = vmatprep.subr.bf16.mxu0 %v937_v0 }
  0x45   : > { %762 = vmatpush3.bf16.msra.mxu1 %v761_v20 }
  0x47   : > { %771 = vmatpush3.bf16.msra.mxu0 %v770_v38 }
  0x48   : > { %772 = vmatprep.subr.bf16.mxu0 %v937_v0 }
  0x4b   : > { %774 = vmatpush3.bf16.msra.mxu0 %v773_v41 }
 0x111   : > { %v371_v22 = vpop.f32.mrb[0].mxu0 }
 0x112   : > { %v372_v23 = vadd.f32 %v661_v21, %v371_v22  ;;  %v706_v24 = vpop.f32.mrb[1].mxu0 }
 0x114   : > { %v663_v25 = vmul.f32 -1.442695, %v372_v23 }
 0x116   : > { %830 = vpow2.f32 %v663_v25 }
 0x120   : > { %v831_v26 = vpop.eup %830 }
 0x121   : > { %v378_v27 = vadd.f32 1.0, %v831_v26 }
 0x123   : > { %832 = vrcp.f32 %v378_v27 }
 0x12d   : > { %v833_v28 = vpop.eup %832 }
 0x12e   : > { %v381_v29 = vmul.f32 %v833_v28, %v372_v23 }
 0x130   : > { %724 = vmatmul.mubr.msk.f32.vlgmr.msra.gmra.mrb[0].mxu1 %vm397_vm2, %v381_v29 }
 0x203   : > { %v467_v43 = vpop.f32.mrb[0].mxu1 }
 0x204   : > { %v468_v44 = vadd.f32 %v664_v42, %v467_v43  ;;  %v725_v45 = vpop.f32.mrb[1].mxu1 }
 0x206   : > { %v666_v46 = vmul.f32 -1.442695, %v468_v44 }
 0x208   : > { %834 = vpow2.f32 %v666_v46 }
 0x212   : > { %v835_v47 = vpop.eup %834 }
 0x213   : > { %v474_v48 = vadd.f32 1.0, %v835_v47 }
 0x215   : > { %836 = vrcp.f32 %v474_v48 }
 0x21f   : > { %v837_v49 = vpop.eup %836 }
 0x220   : > { %v477_v50 = vmul.f32 %v837_v49, %v468_v44 }
 0x222   : > { %743 = vmatmul.mubr.msk.f32.vlgmr.msra.gmra.mrb[2].mxu0 %vm397_vm2, %v477_v50 }
 0x2f5   : > { %v562_v52 = vpop.f32.mrb[2].mxu0 }
 0x2f6   : > { %v563_v53 = vadd.f32 %v667_v51, %v562_v52  ;;  %v744_v54 = vpop.f32.mrb[3].mxu0 }
 0x2f8   : > { %567 = vst.msk [vmem:[%s284_s19] sm:$0xff] %vm566_vm3, %v563_v53 }
 0x2f9   : > { %879 = shalt.err (!%p876_p7)
}
 0x2fa   : > { %s880_s17 = scalar_lea.hbm %s1146_s23, 128  ;;  %s884_s16 = scalar_lea.hbm %s1195_s7, 256 }
 0x2fb   : > { %p881_p8 = scmp.ne.s32.totalorder %s1146_s23, %s880_s17  ;;  %p885_p1 = scmp.lt.u32.totalorder %s1146_s23, %s1195_s7 }
 0x2fc   : > { %p886_p0 = scmp.lt.u32.totalorder %s884_s16, %s880_s17  ;;  %p888_p6 = scmp.lt.u32.totalorder %s880_s17, %s1146_s23 }
 0x2fd   : > { %p882_p11 = pnand %p881_p8, %p1206_p9 }
 0x2fe   : > { %p887_p5 = por %p886_p0, %p885_p1 }
 0x2ff   : > { %p883_p13 = pneg %p882_p11 }
 0x300   : > { %p889_p10 = por %p888_p6, %p887_p5 }
 0x302   : > { %p890_p12 = pnand %p889_p10, %p883_p13 }
 0x304   : > { %893 = shalt.err (!%p890_p12)
}
 0x305   : > { %779 = dma.vmem_to_hbm [thread:$0]  (%p1206_p9), %s1148_s20, 128, %s1146_s23, %s569_s29  }
 0x306 PF: > { %p791_p2 = scmp.ge.s32.totalorder %s932_s27, 2  ;;  %s594_s21 = sand.u32 1, %s920_s24  }
 0x307   : > { %p1207_p3 = scmp.ne.s32.totalorder %s1200_s12, 0  ;;  %s595_s22 = scalar_lea.sflag [#allocation4], %s594_s21 }
 0x309   : > { %p786_p4 = pnand %p791_p2, %p1207_p3 }
 0x30b   : > { %915 = dma.done.wait (!%p786_p4), %s595_s22, 128  }
 0x30c   : > { %917 = vsyncadd (!%p786_p4), %s595_s22, 4294967168  ;;  %p18_p7 = scmp.ge.s32.totalorder %s1006_s30, 4   ;;  %s1208_s24 = smov %s924_s25 }
 0x30d   : > { %s1209_s25 = smov %s928_s26  ;;  %s1210_s26 = smov %s1017_s10 }
 0x30e   : > { %s1211_s27 = smov %s1006_s30  ;;  %20 = sbr.rel (!%p18_p7) target bundleno = 4 (0x4), region = 88 }
 0x315   :  { %600 = vsyncpa [#allocation3], 1 }
 0x316   :  { %602 = vsyncpa [#allocation3 + $0x1], 1 }
 0x317   :  { %603 = vsyncpa [#allocation4], 1 }
 0x318   :  { %605 = vsyncpa [#allocation4 + $0x1], 1 }

</bundles_post_ra>
